<compile_context>
chip_gen: v5e
topology: v5e:2x2
jax: 0.10.0
libtpu: 0.0.40
codegen_flags: <defaults>
</compile_context>

<pallas_src>
import jax
import jax.numpy as jnp
from jax.experimental import pallas as pl
from jax.experimental.pallas import tpu as pltpu


def output_head_kernel(x_ref, w_ref, b_ref, score_ref, geo_ref):
    # x_ref: (1, 32, tm); w_ref: (9, 32); b_ref: (9, 1)
    # score_ref: (1, 1, tm); geo_ref: (1, 8, tm)
    x = x_ref[0]                                                   # (32, tm)
    out = jnp.dot(w_ref[...], x, preferred_element_type=jnp.float32)
    out = out + b_ref[...]                                         # (9, tm)
    # rows 0..7 = geometry (no activation), row 8 = score (sigmoid on EUP).
    geo_ref[0] = out[:8, :].astype(geo_ref.dtype)
    score_ref[0] = jax.nn.sigmoid(out[8:9, :]).astype(score_ref.dtype)


def output_head(x, w_score, b_score, w_geo, b_geo, *, tm=2048):
    """x: (B, 32, H, W) NCHW. Returns (score (B,1,H,W), geometry (B,8,H,W))."""
    B, C, H, W = x.shape
    assert C == 32
    HW = H * W

    # Free reshape: merge spatial dims, keep channels on the sublane axis.
    xf = x.reshape(B, C, HW)

    # Pixel tile: multiple of 128 lanes, no larger than needed for one image.
    tm_eff = min(tm, ((HW + 127) // 128) * 128)
    nblk = pl.cdiv(HW, tm_eff)

    # Fused weights: geo rows first (0..7), score row last (8).
    w = jnp.concatenate([w_geo.reshape(8, C), w_score.reshape(1, C)], axis=0)  # (9, 32)
    b = jnp.concatenate([b_geo.reshape(8), b_score.reshape(1)]).reshape(9, 1)  # (9, 1)

    score_f, geo_f = pl.pallas_call(
        output_head_kernel,
        out_shape=(
            jax.ShapeDtypeStruct((B, 1, HW), x.dtype),
            jax.ShapeDtypeStruct((B, 8, HW), x.dtype),
        ),
        grid=(B, nblk),
        in_specs=[
            pl.BlockSpec((1, C, tm_eff), lambda bi, pi: (bi, 0, pi)),  # x tile
            pl.BlockSpec((9, C), lambda bi, pi: (0, 0)),               # fused weight
            pl.BlockSpec((9, 1), lambda bi, pi: (0, 0)),               # fused bias
        ],
        out_specs=(
            pl.BlockSpec((1, 1, tm_eff), lambda bi, pi: (bi, 0, pi)),  # score
            pl.BlockSpec((1, 8, tm_eff), lambda bi, pi: (bi, 0, pi)),  # geometry
        ),
        compiler_params=pltpu.CompilerParams(
            dimension_semantics=("parallel", "parallel")),
    )(xf, w, b)

    score = score_f.reshape(B, 1, H, W)
    geo = geo_f.reshape(B, 8, H, W)
    return score, geo


def _init_params(key):
    # Deterministic init mimicking PyTorch Conv2d default (uniform +- 1/sqrt(fan_in)).
    k_ws, k_bs, k_wg, k_bg = jax.random.split(key, 4)
    bound = 1.0 / jnp.sqrt(32.0)
    w_score = jax.random.uniform(k_ws, (1, 32, 1, 1), jnp.float32, -bound, bound)
    b_score = jax.random.uniform(k_bs, (1,), jnp.float32, -bound, bound)
    w_geo = jax.random.uniform(k_wg, (8, 32, 1, 1), jnp.float32, -bound, bound)
    b_geo = jax.random.uniform(k_bg, (8,), jnp.float32, -bound, bound)
    return w_score, b_score, w_geo, b_geo


def _reference(x, w_score, b_score, w_geo, b_geo):
    # Plain-JAX reference of the 1x1 convs for a sanity check.
    ws = w_score.reshape(1, 32)
    wg = w_geo.reshape(8, 32)
    s = jnp.einsum("bchw,oc->bohw", x, ws) + b_score[None, :, None, None]
    g = jnp.einsum("bchw,oc->bohw", x, wg) + b_geo[None, :, None, None]
    return jax.nn.sigmoid(s), g


if __name__ == "__main__":
    key = jax.random.PRNGKey(0)
    k_x, k_p = jax.random.split(key)

    B, C, H, W = 2, 32, 16, 16
    x = jax.random.normal(k_x, (B, C, H, W), jnp.float32)
    w_score, b_score, w_geo, b_geo = _init_params(k_p)

    score, geo = output_head(x, w_score, b_score, w_geo, b_geo)
    jax.block_until_ready((score, geo))

    score_ref, geo_ref = _reference(x, w_score, b_score, w_geo, b_geo)
    assert score.shape == (B, 1, H, W) and geo.shape == (B, 8, H, W)
    assert jnp.allclose(score, score_ref, atol=1e-5, rtol=1e-5)
    assert jnp.allclose(geo, geo_ref, atol=1e-5, rtol=1e-5)

    print("KERNEL_OK")
</pallas_src>

<mosaic_0001>
module attributes {stable_mosaic.version = 11 : i64} {
  func.func @output_head_kernel(%arg0: i32, %arg1: i32, %arg2: memref<1x32x256xf32, #tpu.memory_space<vmem>>, %arg3: memref<9x32xf32, #tpu.memory_space<vmem>>, %arg4: memref<9x1xf32, #tpu.memory_space<vmem>>, %arg5: memref<1x1x256xf32, #tpu.memory_space<vmem>>, %arg6: memref<1x8x256xf32, #tpu.memory_space<vmem>>) attributes {dimension_semantics = [#tpu.dimension_semantics<parallel>, #tpu.dimension_semantics<parallel>], iteration_bounds = array<i64: 2, 1>, scalar_prefetch = 0 : i64, scratch_operands = 0 : i64, tpu.core_type = #tpu.core_type<tc>, window_params = [{transform_indices = @transform_0, window_bounds = array<i64: 1, 32, 256>}, {pipeline_mode = #tpu.pipeline_mode<synchronous>, transform_indices = @transform_1, window_bounds = array<i64: 9, 32>}, {pipeline_mode = #tpu.pipeline_mode<synchronous>, transform_indices = @transform_2, window_bounds = array<i64: 9, 1>}, {transform_indices = @transform_3, window_bounds = array<i64: 1, 1, 256>}, {transform_indices = @transform_4, window_bounds = array<i64: 1, 8, 256>}]} {
    %c0 = arith.constant 0 : index
    %c0_0 = arith.constant 0 : index
    %c0_1 = arith.constant 0 : index
    %0 = vector.load %arg2[%c0, %c0_0, %c0_1] : memref<1x32x256xf32, #tpu.memory_space<vmem>>, vector<1x32x256xf32>
    %1 = vector.shape_cast %0 : vector<1x32x256xf32> to vector<32x256xf32>
    %c0_2 = arith.constant 0 : index
    %c0_3 = arith.constant 0 : index
    %2 = vector.load %arg3[%c0_2, %c0_3] : memref<9x32xf32, #tpu.memory_space<vmem>>, vector<9x32xf32>
    %cst = arith.constant dense<0.000000e+00> : vector<9x256xf32>
    %3 = tpu.matmul %2, %1, %cst {dimension_numbers = #tpu.dot_dimension_numbers<[1], [0], [0], [1], [0, 0, 1, 1], [], []>} : vector<9x32xf32>, vector<32x256xf32>, vector<9x256xf32> -> vector<9x256xf32>
    %c0_4 = arith.constant 0 : index
    %c0_5 = arith.constant 0 : index
    %4 = vector.load %arg4[%c0_4, %c0_5] : memref<9x1xf32, #tpu.memory_space<vmem>>, vector<9x1xf32>
    %5 = vector.broadcast %4 : vector<9x1xf32> to vector<9x256xf32>
    %6 = arith.addf %3, %5 : vector<9x256xf32>
    %7 = vector.extract_strided_slice %6 {offsets = [0, 0], sizes = [8, 256], strides = [1, 1]} : vector<9x256xf32> to vector<8x256xf32>
    %c0_6 = arith.constant 0 : index
    %c0_7 = arith.constant 0 : index
    %c0_8 = arith.constant 0 : index
    %8 = vector.load %arg6[%c0_6, %c0_7, %c0_8] : memref<1x8x256xf32, #tpu.memory_space<vmem>>, vector<1x8x256xf32>
    %9 = vector.shape_cast %8 : vector<1x8x256xf32> to vector<8x256xf32>
    %10 = vector.shape_cast %7 : vector<8x256xf32> to vector<1x8x256xf32>
    tpu.vector_store %arg6[%c0_6, %c0_7, %c0_8], %10 {strides = array<i32>} : memref<1x8x256xf32, #tpu.memory_space<vmem>>, vector<1x8x256xf32>,
    %11 = vector.extract_strided_slice %6 {offsets = [8, 0], sizes = [1, 256], strides = [1, 1]} : vector<9x256xf32> to vector<1x256xf32>
    %12 = arith.negf %11 : vector<1x256xf32>
    %13 = math.exp %12 : vector<1x256xf32>
    %cst_9 = arith.constant 1.000000e+00 : f32
    %14 = vector.broadcast %cst_9 : f32 to vector<1x256xf32>
    %15 = arith.addf %14, %13 : vector<1x256xf32>
    %16 = arith.divf %14, %15 : vector<1x256xf32>
    %c0_10 = arith.constant 0 : index
    %c0_11 = arith.constant 0 : index
    %c0_12 = arith.constant 0 : index
    %17 = vector.load %arg5[%c0_10, %c0_11, %c0_12] : memref<1x1x256xf32, #tpu.memory_space<vmem>>, vector<1x1x256xf32>
    %18 = vector.shape_cast %17 : vector<1x1x256xf32> to vector<1x256xf32>
    %19 = vector.shape_cast %16 : vector<1x256xf32> to vector<1x1x256xf32>
    tpu.vector_store %arg5[%c0_10, %c0_11, %c0_12], %19 {strides = array<i32>} : memref<1x1x256xf32, #tpu.memory_space<vmem>>, vector<1x1x256xf32>,
    return
  }
  func.func @transform_0(%arg0: i32, %arg1: i32) -> (i32, i32, i32) {
    %c0_i32 = arith.constant 0 : i32
    %c0_i32_0 = arith.constant 0 : i32
    return %arg0, %c0_i32, %arg1 : i32, i32, i32
  }
  func.func @transform_1(%arg0: i32, %arg1: i32) -> (i32, i32) {
    %c0_i32 = arith.constant 0 : i32
    %c0_i32_0 = arith.constant 0 : i32
    %c0_i32_1 = arith.constant 0 : i32
    return %c0_i32, %c0_i32_0 : i32, i32
  }
  func.func @transform_2(%arg0: i32, %arg1: i32) -> (i32, i32) {
    %c0_i32 = arith.constant 0 : i32
    %c0_i32_0 = arith.constant 0 : i32
    %c0_i32_1 = arith.constant 0 : i32
    return %c0_i32, %c0_i32_0 : i32, i32
  }
  func.func @transform_3(%arg0: i32, %arg1: i32) -> (i32, i32, i32) {
    %c0_i32 = arith.constant 0 : i32
    %c0_i32_0 = arith.constant 0 : i32
    return %arg0, %c0_i32, %arg1 : i32, i32, i32
  }
  func.func @transform_4(%arg0: i32, %arg1: i32) -> (i32, i32, i32) {
    %c0_i32 = arith.constant 0 : i32
    %c0_i32_0 = arith.constant 0 : i32
    return %arg0, %c0_i32, %arg1 : i32, i32, i32
  }
}

</mosaic_0001>

<bundles_post_ra>
// kernel: tpu_custom_call.1
= control target key start
LH: loop header
LB: loop body
LE: loop exit
PB: predicated region body
PF: predicated region fallthrough
CT: control target
= control target key end

     0   :  { %10 = vsyncpa [#allocation3], 0  ;;  %s979_s0 = inlined_call_operand.hbm [shape: f32[2,32,256], index: 0, kind: input, shape index: {}]   ;;  %s980_s1 = inlined_call_operand.vmem [shape: f32[9,32], index: 1, kind: input, shape index: {}]   ;;  %s981_s2 = inlined_call_operand.vmem [shape: f32[9,1], index: 2, kind: input, shape index: {}]   ;;  %s982_s3 = inlined_call_operand.hbm [shape: f32[2,1,256], index: 3, kind: output, shape index: {0}]   ;;  %s983_s4 = inlined_call_operand.hbm [shape: f32[2,8,256], index: 4, kind: output, shape index: {1}]  }
   0x1   :  { %12 = vsyncpa [#allocation3 + $0x1], 0 }
   0x2   :  { %13 = vsyncpa [#allocation4], 0 }
   0x3   :  { %15 = vsyncpa [#allocation4 + $0x1], 0 }
   0x4   :  { %16 = vsyncpa [#allocation7], 0 }
   0x5   :  { %18 = vsyncpa [#allocation7 + $0x1], 0  ;;  %s824_s15 = smov 0   ;;  %s826_s16 = smov 0  }
   0x6   :  { %s828_s17 = smov 0   ;;  %s830_s18 = smov 0  }
   0x7   :  { %s832_s19 = smov 0   ;;  %s834_s20 = smov 0  }
   0x8 LB: > { %s537_s21 = sadd.s32 4294967295, %s794_s20   ;;  %s538_s22 = sadd.s32 4294967294, %s794_s20   ;;  %s794_s20 = sphi %s834_s20, %s24_s20   ;;  %s790_s19 = sphi %s832_s19, %s994_s19   ;;  %s786_s18 = sphi %s830_s18, %s993_s18   ;;  %s782_s17 = sphi %s828_s17, %s992_s17   ;;  %s778_s16 = sphi %s826_s16, %s991_s16   ;;  %s774_s15 = sphi %s824_s15, %s990_s15  }
   0x9   : > { %s36_s23 = sadd.s32 1, %s790_s19  ;;  %s45_s24 = sadd.s32 1, %s782_s17 }
   0xa   : > { %p38_p0 = scmp.ge.s32.totalorder %s36_s23, 2  ;;  %p52_p1 = scmp.ne.s32.totalorder %s782_s17, %s778_s16 }
   0xb   : > { %p53_p2 = scmp.eq.s32.totalorder %s794_s20, 0  ;;  %p58_p3 = scmp.ne.s32.totalorder %s778_s16, %s774_s15 }
   0xc   : > { %s996_s23 = smov (%p38_p0, %s36_s23), 0  ;;  %p59_p5 = scmp.eq.s32.totalorder %s537_s21, 0 }
   0xd   : > { %p865_p4 = por %p53_p2, %p52_p1  ;;  %s40_s26 = ssub.s32 %s790_s19, %s996_s23 }
   0xe   : > { %p126_p6 = scmp.eq.s32.totalorder %s537_s21, 1  ;;  %p43_p7 = scmp.eq.s32.totalorder %s40_s26, 0 }
   0xf   : > { %p871_p8 = por %p59_p5, %p58_p3  ;;  %p132_p10 = scmp.eq.s32.totalorder %s538_s22, 1 }
  0x10   : > { %p875_p9 = por %p126_p6, %p52_p1  ;;  %p540_p12 = scmp.ge.s32.totalorder %s794_s20, 2 }
  0x11   : > { %s880_s29 = scalar_select %p43_p7, %s782_s17, %s45_s24  }
  0x12   : > { %p882_p11 = por %p132_p10, %p58_p3  ;;  %p588_p13 = scmp.lt.s32.totalorder %s794_s20, 2 }
  0x13   : > { %s186_s5 = sand.u32 1, %s782_s17   ;;  %s561_s7 = sshll.u32 %s790_s19, 6 }
  0x14   : > { %s541_s6 = sshll.u32 %s186_s5, 6  ;;  %s197_s10 = scalar_lea.hbm %s979_s0, %s561_s7 }
  0x15   : > { %s190_s11 = scalar_lea.vmem [#allocation2], %s541_s6  ;;  %s198_s13 = sshll.u32 %s197_s10, 4  ;;  %s199_s13 = int_to_ptr.hbm [resolvable:$true] %s198_s13 }
  0x16   : > { %s200_s12 = sshll.u32 %s190_s11, 4  ;;  %p578_p0 = pnand %p588_p13, %p865_p4  ;;  %s201_s12 = int_to_ptr.vmem [resolvable:$true] %s200_s12 }
  0x17   : > { %p544_p1 = scmp.ge.s32.totalorder %s794_s20, 1  ;;  %s187_s14 = scalar_lea.sflag [#allocation3], %s186_s5 }
  0x18   : > { %s796_s21 = smov 256   ;;  %s797_s22 = smov 16  }
  0x19   : > { %580 = dma.hbm_to_vmem [thread:$0]  (!%p578_p0), %s199_s13, 1024, %s201_s12, %s187_s14, %s796_s21, %s796_s21, %s797_s22  }
  0x1a   : > { %p208_p2 = scmp.lt.s32.totalorder %s794_s20, 3 }
  0x1c   : > { %p209_p3 = pnand %p544_p1, %p208_p2 }
  0x1d   : > { %s898_s24 = sand.u32 (!%p209_p3), 1, %s778_s16  }
  0x1e   : > { %212 = sbr.rel (%p209_p3) target bundleno = 214 (0xd6), region = 32  ;;  %s545_s26 = sshll.u32 (!%p209_p3), %s898_s24, 6 }
  0x1f   : > { %s215_s6 = scalar_lea.sflag (!%p209_p3), [#allocation3], %s898_s24  ;;  %s218_s7 = scalar_lea.vmem (!%p209_p3), [#allocation2], %s545_s26 }
  0x23   : > { %761 = dma.done.wait (%p871_p8), %s215_s6, 1024  }
  0x24   : > { %763 = vsyncadd (%p871_p8), %s215_s6, 4294966272  ;;  %v798_v0 = vmov 0   ;;  %v258_v1 = vld [vmem:[%s218_s7 + $0x30] sm:$0xff]  ;;  %v259_v2 = vld [vmem:[%s218_s7 + $0x38] sm:$0xff]  ;;  %vm274_vm0 = vcmask 261120   ;;  %s562_s13 = sshll.u32 %s786_s18, 4 }
  0x25   : > { %641 = vset.pattern.permute.xlu0 %v798_v0  ;;  %v256_v3 = vld [vmem:[%s218_s7 + $0x20] sm:$0xff]  ;;  %563 = vmatpush.msra.mxu2 %v258_v1  ;;  %v257_v4 = vld [vmem:[%s218_s7 + $0x28] sm:$0xff]  ;;  %v254_v5 = vld [vmem:[%s218_s7 + $0x10] sm:$0xff]  ;;  %s547_s14 = sshll.u32 %s898_s24, 4  ;;  %s413_s26 = scalar_lea.hbm %s983_s4, %s562_s13 }
  0x26   : > { %567 = vmatpush.msra.mxu3 %v259_v2  ;;  %v255_v6 = vld [vmem:[%s218_s7 + $0x18] sm:$0xff]  ;;  %293 = vmatpush.msra.mxu0 %v258_v1  ;;  %v252_v7 = vld [vmem:[%s218_s7] sm:$0xff]  ;;  %v253_v8 = vld [vmem:[%s218_s7 + $0x8] sm:$0xff]  ;;  %s248_s6 = scalar_lea.vmem [#allocation6], %s547_s14  ;;  %s417_s25 = sshll.u32 %s413_s26, 4  ;;  %s418_s25 = int_to_ptr.hbm [resolvable:$true] %s417_s25 }
  0x27   : > { %316 = vmatpush.msra.mxu1 %v259_v2  ;;  %564 = vmatpush.msra.mxu2 %v256_v3  ;;  %v261_v9 = vld [vmem:[%s980_s1 + $0x8] sm:$0x1]  ;;  %v260_v10 = vld [vmem:[%s980_s1] sm:$0xff]  ;;  %s415_s7 = sshll.u32 %s248_s6, 4  ;;  %s384_s27 = scalar_lea.sflag [#allocation7], %s898_s24  ;;  %s416_s7 = int_to_ptr.vmem [resolvable:$true] %s415_s7 }
  0x28   : > { %568 = vmatpush.msra.mxu3 %v257_v4  ;;  %294 = vmatpush.msra.mxu0 %v256_v3  ;;  %v263_v11 = vld [vmem:[%s981_s2 + $0x8] sm:$0x1]  ;;  %v262_v12 = vld [vmem:[%s981_s2] sm:$0xff]  ;;  %s694_s5 = sshra.s32 %s418_s25, 4  ;;  %s700_s11 = scalar_lea.hbm %s983_s4, 32  ;;  %s695_s5 = int_to_ptr.hbm [resolvable:$true] %s694_s5 }
  0x29   : > { %317 = vmatpush.msra.mxu1 %v257_v4  ;;  %565 = vmatpush.msra.mxu2 %v254_v5  ;;  %s696_s8 = scalar_lea.hbm %s695_s5, 16  ;;  %p701_p7 = scmp.lt.s32.totalorder %s695_s5, %s983_s4 }
  0x2a   : > { %569 = vmatpush.msra.mxu3 %v255_v6  ;;  %295 = vmatpush.msra.mxu0 %v254_v5  ;;  %p697_p4 = scmp.ne.s32.totalorder %s695_s5, %s696_s8  ;;  %p702_p8 = scmp.lt.s32.totalorder %s700_s11, %s696_s8 }
  0x2b   : > { %318 = vmatpush.msra.mxu1 %v255_v6  ;;  %566 = vmatpush.msra.mxu2 %v252_v7 }
  0x2c   : > { %570 = vmatpush.msra.mxu3 %v253_v8  ;;  %549 = vmatmul.msk.f32.vlgmr.msra.gmra.mxu2 %vm274_vm0, %v261_v9  ;;  %p698_p5 = pnand %p697_p4, %p875_p9  ;;  %p703_p10 = por %p702_p8, %p701_p7 }
  0x2d   : > { %551 = vmatmul.msk.f32.vlgmr.msra.gmra.mxu3 %vm274_vm0, %v261_v9  ;;  %296 = vmatpush.msra.mxu0 %v252_v7 }
  0x2e   : > { %319 = vmatpush.msra.mxu1 %v253_v8  ;;  %548 = vmatmul.msk.f32.vlgmr.msra.gmra.mxu0 %vm274_vm0, %v260_v10  ;;  %p699_p6 = pneg %p698_p5 }
  0x2f   : > { %550 = vmatmul.msk.f32.vlgmr.msra.gmra.mxu1 %vm274_vm0, %v260_v10  ;;  %271 = vperm.xlu0 %641, %v263_v11  }
  0x30   : > { %p704_p13 = pnand %p703_p10, %p699_p6 }
  0x37   : > { %266 = vperm.xlu0 %641, %v262_v12  }
  0xa1   : > { %v272_v13 = vpop.permute.xlu0 %271 }
  0xa9   : > { %v267_v14 = vpop.permute.xlu0 %266 }
  0xab   : > { %v298_v15 = vpop.f32.mrf.mxu0 }
  0xac   : > { %v321_v16 = vpop.f32.mrf.mxu1  ;;  %v299_v17 = vadd.f32 %v298_v15, %v267_v14 }
  0xad   : > { %v322_v18 = vadd.f32 %v321_v16, %v267_v14 }
  0xae   : > { %327 = vst [vmem:[%s248_s6] sm:$0xff] %v299_v17 }
  0xaf   : > { %v301_v19 = vpop.f32.mrf.mxu2  ;;  %328 = vst [vmem:[%s248_s6 + $0x8] sm:$0xff] %v322_v18 }
  0xb0   : > { %v324_v20 = vpop.f32.mrf.mxu3  ;;  %v302_v21 = vadd.f32 %v301_v19, %v272_v13 }
  0xb1   : > { %v325_v22 = vadd.f32 %v324_v20, %v272_v13 }
  0xb2   : > { %707 = shalt.err (!%p704_p13)
}
  0xb3   : > { %574 = dma.vmem_to_hbm [thread:$0]  (%p875_p9), %s416_s7, 256, %s418_s25, %s384_s27   ;;  %v552_v23 = vmul.f32 -1.442695, %v302_v21  ;;  %v553_v24 = vmul.f32 -1.442695, %v325_v22  ;;  %v373_v44 = vlaneseq  ;;  %vm370_vm8 = vcmask 1040384  }
  0xb4   : > { %s546_s14 = sshll.u32 %s898_s24, 1  ;;  %s556_s21 = sshll.u32 %s786_s18, 1 }
  0xb5   : > { %642 = vpow2.f32 %v552_v23  ;;  %s396_s6 = scalar_lea.hbm %s982_s3, %s556_s21  ;;  %s241_s18 = scalar_lea.vmem [#allocation5], %s546_s14  ;;  %vm375_vm10 = vcmp.lt.s32.totalorder %v373_v44, 256 }
  0xb6   : > { %644 = vpow2.f32 %v553_v24  ;;  %s398_s7 = sshll.u32 %s241_s18, 4  ;;  %s400_s25 = sshll.u32 %s396_s6, 4  ;;  %s399_s7 = int_to_ptr.vmem [resolvable:$true] %s398_s7  ;;  %s401_s25 = int_to_ptr.hbm [resolvable:$true] %s400_s25 }
  0xb7   : > { %s379_s27 = scalar_lea.sflag [#allocation4], %s898_s24  ;;  %s722_s5 = sshra.s32 %s401_s25, 4  ;;  %s723_s5 = int_to_ptr.hbm [resolvable:$true] %s722_s5 }
  0xb8   : > { %s724_s8 = scalar_lea.hbm %s723_s5, 2  ;;  %s728_s11 = scalar_lea.hbm %s982_s3, 4 }
  0xb9   : > { %p725_p0 = scmp.ne.s32.totalorder %s723_s5, %s724_s8  ;;  %p729_p3 = scmp.lt.s32.totalorder %s723_s5, %s982_s3 }
  0xba   : > { %p730_p4 = scmp.lt.s32.totalorder %s728_s11, %s724_s8 }
  0xbb   : > { %v643_v25 = vpop.eup %642  ;;  %p726_p1 = pnand %p725_p0, %p875_p9 }
  0xbc   : > { %v645_v26 = vpop.eup %644  ;;  %v335_v27 = vadd.f32 1.0, %v643_v25  ;;  %p731_p5 = por %p730_p4, %p729_p3 }
  0xbd   : > { %v336_v28 = vadd.f32 1.0, %v645_v26  ;;  %p727_p2 = pneg %p726_p1 }
  0xbe   : > { %646 = vrcp.f32 %v335_v27  ;;  %vm342_vm3 = vweird.f32 %v335_v27  ;;  %v348_v39 = vand.u32 2147483648, %v335_v27  ;;  %v346_v43 = vand.u32 2147483647, %v335_v27 }
  0xbf   : > { %648 = vrcp.f32 %v336_v28  ;;  %v363_v36 = vand.u32 2147483648, %v336_v28  ;;  %v361_v38 = vand.u32 2147483647, %v336_v28  ;;  %vm357_vm4 = vweird.f32 %v336_v28  ;;  %p732_p6 = pnand %p731_p5, %p727_p2 }
  0xc0   : > { %v349_v48 = vor.u32 1.1754944e-38, %v348_v39  ;;  %vm347_vm9 = vcmp.eq.f32.partialorder %v346_v43, 8.507059e+37 }
  0xc1   : > { %v364_v45 = vor.u32 1.1754944e-38, %v363_v36  ;;  %vm362_vm7 = vcmp.eq.f32.partialorder %v361_v38, 8.507059e+37 }
  0xc4   : > { %v647_v29 = vpop.eup %646 }
  0xc5   : > { %v649_v30 = vpop.eup %648  ;;  %v338_v31 = vmul.f32 %v647_v29, %v335_v27  ;;  %vm343_vm1 = vweird.f32 %v647_v29 }
  0xc6   : > { %v353_v32 = vmul.f32 %v649_v30, %v336_v28  ;;  %vm358_vm2 = vweird.f32 %v649_v30  ;;  %vm939_vm5 = vmor %vm342_vm3, %vm343_vm1 }
  0xc7   : > { %v339_v33 = vsub.f32 1.0, %v338_v31  ;;  %vm359_vm6 = vmor %vm357_vm4, %vm358_vm2 }
  0xc8   : > { %v354_v34 = vsub.f32 1.0, %v353_v32 }
  0xc9   : > { %v340_v35 = vmul.f32 %v647_v29, %v339_v33 }
  0xca   : > { %v355_v37 = vmul.f32 %v649_v30, %v354_v34 }
  0xcb   : > { %v341_v40 = vadd.f32 %v647_v29, %v340_v35 }
  0xcc   : > { %v356_v41 = vadd.f32 %v649_v30, %v355_v37 }
  0xcd   : > { %v345_v46 = vsel %vm939_vm5, %v647_v29, %v341_v40 }
  0xce   : > { %v360_v47 = vsel %vm359_vm6, %v649_v30, %v356_v41  ;;  %v350_v51 = vsel %vm347_vm9, %v349_v48, %v345_v46 }
  0xcf   : > { %v365_v49 = vsel %vm362_vm7, %v364_v45, %v360_v47 }
  0xd0   : > { %v369_v50 = vrot.slane %v365_v49, 7 }
  0xd2   : > { %v371_v52 = vsel %vm370_vm8, %v350_v51, %v369_v50 }
  0xd3   : > { %377 = vst.msk [vmem:[%s241_s18] sm:$0x3] %vm375_vm10, %v371_v52 }
  0xd4   : > { %735 = shalt.err (!%p732_p6)
}
  0xd5   : > { %573 = dma.vmem_to_hbm [thread:$0]  (%p875_p9), %s399_s7, 32, %s401_s25, %s379_s27  }
  0xd6 PF: > { %s429_s24 = sand.u32 1, %s774_s15   ;;  %p582_p7 = pnand %p540_p12, %p882_p11 }
  0xd7   : > { %s430_s14 = scalar_lea.sflag [#allocation4], %s429_s24 }
  0xd8   : > { %p583_p8 = pneg %p582_p7 }
  0xda   : > { %765 = dma.done.wait (%p583_p8), %s430_s14, 32  }
  0xdb   : > { %767 = vsyncadd (%p583_p8), %s430_s14, 4294967264  ;;  %s440_s21 = scalar_lea.sflag [#allocation7], %s429_s24 }
  0xdc   : > { %769 = dma.done.wait (%p583_p8), %s440_s21, 256  }
  0xdd   : > { %771 = vsyncadd (%p583_p8), %s440_s21, 4294967040  ;;  %s24_s20 = sadd.s32 1, %s794_s20   ;;  %s990_s15 = smov %s778_s16 }
  0xde   : > { %p21_p10 = scmp.ge.s32.totalorder %s24_s20, 4   ;;  %s991_s16 = smov %s782_s17 }
  0xdf   : > { %s992_s17 = smov %s880_s29  ;;  %s993_s18 = smov %s790_s19 }
  0xe0   : > { %s994_s19 = smov %s996_s23  ;;  %23 = sbr.rel (!%p21_p10) target bundleno = 8 (0x8), region = 94 }
  0xe5   :  { %446 = vsyncpa [#allocation3], 1 }
  0xe6   :  { %448 = vsyncpa [#allocation3 + $0x1], 1 }
  0xe7   :  { %449 = vsyncpa [#allocation4], 1 }
  0xe8   :  { %451 = vsyncpa [#allocation4 + $0x1], 1 }
  0xe9   :  { %452 = vsyncpa [#allocation7], 1 }
  0xea   :  { %454 = vsyncpa [#allocation7 + $0x1], 1 }

</bundles_post_ra>
